<compile_context>
chip_gen: v5e
topology: v5e:2x2
jax: 0.10.0
libtpu: 0.0.40
codegen_flags: <defaults>
</compile_context>

<pallas_src>
import functools

import jax
import jax.numpy as jnp
from jax.experimental import pallas as pl
from jax.experimental.pallas import tpu as pltpu


def _round_up(x, m):
    return (x + m - 1) // m * m


def _deepspeed_mlp_kernel(x_ref, res_ref, attn_b_ref, gamma_ref, beta_ref,
                          inter_w_ref, inter_b_ref, out_w_ref, out_b_ref,
                          o_ref,
                          ra_ref, norm_ref, acc_ref,
                          *, epsilon, use_tanh_gelu, dot_precision):
    k = pl.program_id(1)                      # intermediate-dim tile index (reduction axis)

    @pl.when(k == 0)
    def _():
        # Fused residual add (DeepSpeed `residual_add` input side) + LayerNorm, once per
        # row block; results are kept in VMEM scratch across the i-tile sweep.
        x = x_ref[...].astype(jnp.float32)
        res = res_ref[...].astype(jnp.float32)
        ra = x + res + attn_b_ref[...]
        mu = jnp.mean(ra, axis=-1, keepdims=True)
        var = jnp.mean(jnp.square(ra - mu), axis=-1, keepdims=True)
        norm = (ra - mu) * jax.lax.rsqrt(var + epsilon)
        norm = norm * gamma_ref[...] + beta_ref[...]
        ra_ref[...] = ra
        norm_ref[...] = norm.astype(norm_ref.dtype)   # bf16 MXU operand by default
        acc_ref[...] = jnp.zeros_like(acc_ref)

    # GEMM 1 slab: (bm, H) @ (H, ti) -> (bm, ti), f32 accumulation on the MXU.
    h = jnp.dot(norm_ref[...], inter_w_ref[...],
                preferred_element_type=jnp.float32, precision=dot_precision)
    h = h + inter_b_ref[...]

    # GELU on the (bm, ti) intermediate, in f32 on the VPU/EUP.
    if use_tanh_gelu:
        # tanh approximation (EUP) — enable if the erf VPU polynomial is the critical slot.
        h = 0.5 * h * (1.0 + jnp.tanh(0.7978845608028654 * (h + 0.044715 * h * h * h)))
    else:
        # exact erf GELU, matching DeepSpeed's gelu kernel
        h = 0.5 * h * (1.0 + jax.lax.erf(h * 0.7071067811865476))

    # GEMM 2 partial: (bm, ti) @ (ti, H) accumulated into the f32 scratch.
    acc_ref[...] += jnp.dot(h.astype(out_w_ref.dtype), out_w_ref[...],
                            preferred_element_type=jnp.float32,
                            precision=dot_precision)

    @pl.when(k == pl.num_programs(1) - 1)
    def _():
        # Final fused bias + double residual add (DeepSpeed `residual_add` kernel, mp_scale=1).
        o_ref[...] = (acc_ref[...] + out_b_ref[...] + ra_ref[...]).astype(o_ref.dtype)


def deepspeed_mlp(input_, residual, bias, attn_nw, attn_nb,
                  inter_w, inter_b, output_w, output_b,
                  *, epsilon=1e-5, block_m=256, tile_i=512,
                  use_bf16_mxu=True, use_tanh_gelu=False, dot_precision=None):
    B, S, H = input_.shape
    I = inter_w.shape[1]
    M = B * S

    # Tile sizes: clamp to the (aligned) problem size, then pad the problem up to the tile.
    bm = min(block_m, _round_up(M, 8))          # f32 sublane multiple
    ti = min(tile_i, _round_up(I, 128))         # lane multiple
    Mp = _round_up(M, bm)
    Ip = _round_up(I, ti)

    x2 = input_.reshape(M, H)
    r2 = residual.reshape(M, H)
    if Mp != M:   # padded rows are wasted work only (LayerNorm is per-row)
        x2 = jnp.pad(x2, ((0, Mp - M), (0, 0)))
        r2 = jnp.pad(r2, ((0, Mp - M), (0, 0)))

    compute_dtype = jnp.bfloat16 if use_bf16_mxu else jnp.float32
    iw = inter_w.astype(compute_dtype)
    ow = output_w.astype(compute_dtype)
    ib2 = inter_b.reshape(1, I).astype(jnp.float32)
    if Ip != I:   # zero-padded I columns/rows contribute exactly zero to GEMM2
        iw = jnp.pad(iw, ((0, 0), (0, Ip - I)))
        ow = jnp.pad(ow, ((0, Ip - I), (0, 0)))
        ib2 = jnp.pad(ib2, ((0, 0), (0, Ip - I)))

    attn_b2 = bias.reshape(1, H).astype(jnp.float32)
    gamma2 = attn_nw.reshape(1, H).astype(jnp.float32)
    beta2 = attn_nb.reshape(1, H).astype(jnp.float32)
    ob2 = output_b.reshape(1, H).astype(jnp.float32)

    # VMEM budget: double-buffered pipeline blocks + persistent scratch, with margin.
    cd_bytes = jnp.dtype(compute_dtype).itemsize
    io_bytes = jnp.dtype(input_.dtype).itemsize
    est = 2 * (2 * bm * H * io_bytes                       # x, res tiles
               + H * ti * cd_bytes                         # inter_w tile
               + ti * 4                                    # inter_b tile
               + ti * H * cd_bytes                         # output_w tile
               + bm * H * io_bytes)                        # out tile
    est += 2 * 4 * H * 4                                   # attn_b / gamma / beta / output_b
    est += bm * H * (4 + 4 + cd_bytes)                     # ra, acc (f32) + norm scratch
    vmem_limit = int(min(max(1.25 * est + (2 << 20), 16 << 20), 64 << 20))

    kernel = functools.partial(_deepspeed_mlp_kernel, epsilon=epsilon,
                               use_tanh_gelu=use_tanh_gelu,
                               dot_precision=dot_precision)

    out = pl.pallas_call(
        kernel,
        out_shape=jax.ShapeDtypeStruct((Mp, H), input_.dtype),
        grid_spec=pltpu.PrefetchScalarGridSpec(
            num_scalar_prefetch=0,
            grid=(Mp // bm, Ip // ti),
            in_specs=[
                pl.BlockSpec((bm, H), lambda i, k: (i, 0)),   # input (attn out)
                pl.BlockSpec((bm, H), lambda i, k: (i, 0)),   # residual
                pl.BlockSpec((1, H), lambda i, k: (0, 0)),    # attn bias (tiny, grid-invariant)
                pl.BlockSpec((1, H), lambda i, k: (0, 0)),    # attn_nw (gamma)
                pl.BlockSpec((1, H), lambda i, k: (0, 0)),    # attn_nb (beta)
                pl.BlockSpec((H, ti), lambda i, k: (0, k)),   # inter_w i-tile
                pl.BlockSpec((1, ti), lambda i, k: (0, k)),   # inter_b i-tile
                pl.BlockSpec((ti, H), lambda i, k: (k, 0)),   # output_w i-tile
                pl.BlockSpec((1, H), lambda i, k: (0, 0)),    # output_b
            ],
            out_specs=pl.BlockSpec((bm, H), lambda i, k: (i, 0)),
            scratch_shapes=[
                pltpu.VMEM((bm, H), jnp.float32),    # residual_add (ra)
                pltpu.VMEM((bm, H), compute_dtype),  # LayerNorm output (MXU LHS)
                pltpu.VMEM((bm, H), jnp.float32),    # GEMM2 accumulator
            ],
        ),
        compiler_params=pltpu.CompilerParams(
            dimension_semantics=("parallel", "arbitrary"),
            vmem_limit_bytes=vmem_limit),
    )(x2, r2, attn_b2, gamma2, beta2, iw, ib2, ow, ob2)

    return out[:M].reshape(B, S, H)


def deepspeed_mlp_reference(input_, residual, bias, attn_nw, attn_nb,
                            inter_w, inter_b, output_w, output_b, epsilon=1e-5):
    ra = input_ + residual + bias
    mu = jnp.mean(ra, axis=-1, keepdims=True)
    var = jnp.mean(jnp.square(ra - mu), axis=-1, keepdims=True)
    norm = (ra - mu) * jax.lax.rsqrt(var + epsilon) * attn_nw + attn_nb
    h = norm @ inter_w + inter_b
    h = 0.5 * h * (1.0 + jax.lax.erf(h * 0.7071067811865476))
    y = h @ output_w
    return y + output_b + ra


def _make_case(key, B, S, H, I):
    ks = jax.random.split(key, 9)
    return dict(
        input_=jax.random.normal(ks[0], (B, S, H), jnp.float32),
        residual=jax.random.normal(ks[1], (B, S, H), jnp.float32),
        bias=0.1 * jax.random.normal(ks[2], (H,), jnp.float32),
        attn_nw=1.0 + 0.02 * jax.random.normal(ks[3], (H,), jnp.float32),
        attn_nb=0.02 * jax.random.normal(ks[4], (H,), jnp.float32),
        inter_w=0.02 * jax.random.normal(ks[5], (H, I), jnp.float32),
        inter_b=0.02 * jax.random.normal(ks[6], (I,), jnp.float32),
        output_w=0.02 * jax.random.normal(ks[7], (I, H), jnp.float32),
        output_b=0.02 * jax.random.normal(ks[8], (H,), jnp.float32),
    )


def _check(args, tol, **kw):
    out = jax.block_until_ready(deepspeed_mlp(**args, **kw))
    ref = deepspeed_mlp_reference(**args)
    assert out.shape == ref.shape
    assert jnp.allclose(out, ref, atol=tol, rtol=tol), (
        f"mismatch vs reference: max abs err {float(jnp.max(jnp.abs(out - ref)))}")


if __name__ == "__main__":
    key = jax.random.PRNGKey(0)
    k1, k2 = jax.random.split(key)

    # 1) Small shapes consistent with the module (hidden=128, intermediate=512, batch=2, seq=8).
    case1 = _make_case(k1, B=2, S=8, H=128, I=512)
    _check(case1, tol=2e-2, use_bf16_mxu=True)                 # bf16-MXU fast path
    _check(case1, tol=1e-3, use_bf16_mxu=False)                # f32 path

    # 2) Slightly larger case exercising row-block padding (M=200 -> 256), I tiling with
    #    padding (I=1024, tile_i=384 -> 3 tiles), and the multi-step accumulation grid.
    case2 = _make_case(k2, B=2, S=100, H=256, I=1024)
    _check(case2, tol=2e-2, use_bf16_mxu=True, block_m=128, tile_i=384)

    # TODO(synk): mp_group all-reduce and the q_int8 / attn_nw-is-None (fused_gemm_gelu)
    # branches are not implemented (single-device path only; v7x MXU has no int8 path anyway).
    print("KERNEL_OK")
</pallas_src>

<mosaic_0001>
module attributes {stable_mosaic.version = 11 : i64} {
  func.func @_deepspeed_mlp_kernel(%arg0: i32, %arg1: i32, %arg2: memref<16x128xf32, #tpu.memory_space<vmem>>, %arg3: memref<16x128xf32, #tpu.memory_space<vmem>>, %arg4: memref<1x128xf32, #tpu.memory_space<vmem>>, %arg5: memref<1x128xf32, #tpu.memory_space<vmem>>, %arg6: memref<1x128xf32, #tpu.memory_space<vmem>>, %arg7: memref<128x512xbf16, #tpu.memory_space<vmem>>, %arg8: memref<1x512xf32, #tpu.memory_space<vmem>>, %arg9: memref<512x128xbf16, #tpu.memory_space<vmem>>, %arg10: memref<1x128xf32, #tpu.memory_space<vmem>>, %arg11: memref<16x128xf32, #tpu.memory_space<vmem>>, %arg12: memref<16x128xf32, #tpu.memory_space<vmem>>, %arg13: memref<16x128xbf16, #tpu.memory_space<vmem>>, %arg14: memref<16x128xf32, #tpu.memory_space<vmem>>) attributes {dimension_semantics = [#tpu.dimension_semantics<parallel>, #tpu.dimension_semantics<arbitrary>], iteration_bounds = array<i64: 1, 1>, scalar_prefetch = 0 : i64, scratch_operands = 3 : i64, tpu.core_type = #tpu.core_type<tc>, window_params = [{transform_indices = @transform_0, window_bounds = array<i64: 16, 128>}, {transform_indices = @transform_1, window_bounds = array<i64: 16, 128>}, {pipeline_mode = #tpu.pipeline_mode<synchronous>, transform_indices = @transform_2, window_bounds = array<i64: 1, 128>}, {pipeline_mode = #tpu.pipeline_mode<synchronous>, transform_indices = @transform_3, window_bounds = array<i64: 1, 128>}, {pipeline_mode = #tpu.pipeline_mode<synchronous>, transform_indices = @transform_4, window_bounds = array<i64: 1, 128>}, {transform_indices = @transform_5, window_bounds = array<i64: 128, 512>}, {transform_indices = @transform_6, window_bounds = array<i64: 1, 512>}, {transform_indices = @transform_7, window_bounds = array<i64: 512, 128>}, {pipeline_mode = #tpu.pipeline_mode<synchronous>, transform_indices = @transform_8, window_bounds = array<i64: 1, 128>}, {transform_indices = @transform_9, window_bounds = array<i64: 16, 128>}]} {
    %c0_i32 = arith.constant 0 : i32
    %0 = arith.cmpi eq, %arg1, %c0_i32 : i32
    %1 = arith.extui %0 : i1 to i32
    %c0_i32_0 = arith.constant 0 : i32
    %2 = arith.cmpi ne, %1, %c0_i32_0 : i32
    scf.if %2 {
      %c0_18 = arith.constant 0 : index
      %c0_19 = arith.constant 0 : index
      %26 = vector.load %arg2[%c0_18, %c0_19] : memref<16x128xf32, #tpu.memory_space<vmem>>, vector<16x128xf32>
      %c0_20 = arith.constant 0 : index
      %c0_21 = arith.constant 0 : index
      %27 = vector.load %arg3[%c0_20, %c0_21] : memref<16x128xf32, #tpu.memory_space<vmem>>, vector<16x128xf32>
      %28 = arith.addf %26, %27 : vector<16x128xf32>
      %c0_22 = arith.constant 0 : index
      %c0_23 = arith.constant 0 : index
      %29 = vector.load %arg4[%c0_22, %c0_23] : memref<1x128xf32, #tpu.memory_space<vmem>>, vector<1x128xf32>
      %30 = vector.broadcast %29 : vector<1x128xf32> to vector<16x128xf32>
      %31 = arith.addf %28, %30 : vector<16x128xf32>
      %cst_24 = arith.constant dense<0.000000e+00> : vector<16xf32>
      %32 = vector.multi_reduction <add>, %31, %cst_24 [1] : vector<16x128xf32> to vector<16xf32>
      %33 = vector.shape_cast %32 : vector<16xf32> to vector<16x1xf32>
      %cst_25 = arith.constant 1.280000e+02 : f32
      %34 = vector.broadcast %cst_25 : f32 to vector<16x1xf32>
      %35 = arith.divf %33, %34 : vector<16x1xf32>
      %36 = vector.broadcast %35 : vector<16x1xf32> to vector<16x128xf32>
      %37 = arith.subf %31, %36 : vector<16x128xf32>
      %38 = arith.mulf %37, %37 : vector<16x128xf32>
      %cst_26 = arith.constant dense<0.000000e+00> : vector<16xf32>
      %39 = vector.multi_reduction <add>, %38, %cst_26 [1] : vector<16x128xf32> to vector<16xf32>
      %40 = vector.shape_cast %39 : vector<16xf32> to vector<16x1xf32>
      %cst_27 = arith.constant 1.280000e+02 : f32
      %41 = vector.broadcast %cst_27 : f32 to vector<16x1xf32>
      %42 = arith.divf %40, %41 : vector<16x1xf32>
      %43 = vector.broadcast %35 : vector<16x1xf32> to vector<16x128xf32>
      %44 = arith.subf %31, %43 : vector<16x128xf32>
      %cst_28 = arith.constant 9.99999974E-6 : f32
      %45 = vector.broadcast %cst_28 : f32 to vector<16x1xf32>
      %46 = arith.addf %42, %45 : vector<16x1xf32>
      %47 = math.rsqrt %46 : vector<16x1xf32>
      %48 = vector.broadcast %47 : vector<16x1xf32> to vector<16x128xf32>
      %49 = arith.mulf %44, %48 : vector<16x128xf32>
      %c0_29 = arith.constant 0 : index
      %c0_30 = arith.constant 0 : index
      %50 = vector.load %arg5[%c0_29, %c0_30] : memref<1x128xf32, #tpu.memory_space<vmem>>, vector<1x128xf32>
      %51 = vector.broadcast %50 : vector<1x128xf32> to vector<16x128xf32>
      %52 = arith.mulf %49, %51 : vector<16x128xf32>
      %c0_31 = arith.constant 0 : index
      %c0_32 = arith.constant 0 : index
      %53 = vector.load %arg6[%c0_31, %c0_32] : memref<1x128xf32, #tpu.memory_space<vmem>>, vector<1x128xf32>
      %54 = vector.broadcast %53 : vector<1x128xf32> to vector<16x128xf32>
      %55 = arith.addf %52, %54 : vector<16x128xf32>
      %c0_33 = arith.constant 0 : index
      %c0_34 = arith.constant 0 : index
      %56 = vector.load %arg12[%c0_33, %c0_34] : memref<16x128xf32, #tpu.memory_space<vmem>>, vector<16x128xf32>
      tpu.vector_store %arg12[%c0_33, %c0_34], %31 {strides = array<i32>} : memref<16x128xf32, #tpu.memory_space<vmem>>, vector<16x128xf32>,
      %57 = arith.truncf %55 : vector<16x128xf32> to vector<16x128xbf16>
      %c0_35 = arith.constant 0 : index
      %c0_36 = arith.constant 0 : index
      %58 = vector.load %arg13[%c0_35, %c0_36] : memref<16x128xbf16, #tpu.memory_space<vmem>>, vector<16x128xbf16>
      tpu.vector_store %arg13[%c0_35, %c0_36], %57 {strides = array<i32>} : memref<16x128xbf16, #tpu.memory_space<vmem>>, vector<16x128xbf16>,
      %cst_37 = arith.constant 0.000000e+00 : f32
      %59 = vector.broadcast %cst_37 : f32 to vector<16x128xf32>
      %c0_38 = arith.constant 0 : index
      %c0_39 = arith.constant 0 : index
      %60 = vector.load %arg14[%c0_38, %c0_39] : memref<16x128xf32, #tpu.memory_space<vmem>>, vector<16x128xf32>
      tpu.vector_store %arg14[%c0_38, %c0_39], %59 {strides = array<i32>} : memref<16x128xf32, #tpu.memory_space<vmem>>, vector<16x128xf32>,
    } else {
    }
    %c0 = arith.constant 0 : index
    %c0_1 = arith.constant 0 : index
    %3 = vector.load %arg13[%c0, %c0_1] : memref<16x128xbf16, #tpu.memory_space<vmem>>, vector<16x128xbf16>
    %c0_2 = arith.constant 0 : index
    %c0_3 = arith.constant 0 : index
    %4 = vector.load %arg7[%c0_2, %c0_3] : memref<128x512xbf16, #tpu.memory_space<vmem>>, vector<128x512xbf16>
    %cst = arith.constant dense<0.000000e+00> : vector<16x512xf32>
    %5 = tpu.matmul %3, %4, %cst {dimension_numbers = #tpu.dot_dimension_numbers<[1], [0], [0], [1], [0, 0, 1, 1], [], []>} : vector<16x128xbf16>, vector<128x512xbf16>, vector<16x512xf32> -> vector<16x512xf32>
    %c0_4 = arith.constant 0 : index
    %c0_5 = arith.constant 0 : index
    %6 = vector.load %arg8[%c0_4, %c0_5] : memref<1x512xf32, #tpu.memory_space<vmem>>, vector<1x512xf32>
    %7 = vector.broadcast %6 : vector<1x512xf32> to vector<16x512xf32>
    %8 = arith.addf %5, %7 : vector<16x512xf32>
    %cst_6 = arith.constant 5.000000e-01 : f32
    %9 = vector.broadcast %cst_6 : f32 to vector<16x512xf32>
    %10 = arith.mulf %9, %8 : vector<16x512xf32>
    %cst_7 = arith.constant 0.707106769 : f32
    %11 = vector.broadcast %cst_7 : f32 to vector<16x512xf32>
    %12 = arith.mulf %8, %11 : vector<16x512xf32>
    %13 = math.erf %12 : vector<16x512xf32>
    %cst_8 = arith.constant 1.000000e+00 : f32
    %14 = vector.broadcast %cst_8 : f32 to vector<16x512xf32>
    %15 = arith.addf %14, %13 : vector<16x512xf32>
    %16 = arith.mulf %10, %15 : vector<16x512xf32>
    %c0_9 = arith.constant 0 : index
    %c0_10 = arith.constant 0 : index
    %17 = vector.load %arg14[%c0_9, %c0_10] : memref<16x128xf32, #tpu.memory_space<vmem>>, vector<16x128xf32>
    %18 = arith.truncf %16 : vector<16x512xf32> to vector<16x512xbf16>
    %c0_11 = arith.constant 0 : index
    %c0_12 = arith.constant 0 : index
    %19 = vector.load %arg9[%c0_11, %c0_12] : memref<512x128xbf16, #tpu.memory_space<vmem>>, vector<512x128xbf16>
    %cst_13 = arith.constant dense<0.000000e+00> : vector<16x128xf32>
    %20 = tpu.matmul %18, %19, %cst_13 {dimension_numbers = #tpu.dot_dimension_numbers<[1], [0], [0], [1], [0, 0, 1, 1], [], []>} : vector<16x512xbf16>, vector<512x128xbf16>, vector<16x128xf32> -> vector<16x128xf32>
    %21 = arith.addf %17, %20 : vector<16x128xf32>
    %c0_14 = arith.constant 0 : index
    %c0_15 = arith.constant 0 : index
    %22 = vector.load %arg14[%c0_14, %c0_15] : memref<16x128xf32, #tpu.memory_space<vmem>>, vector<16x128xf32>
    tpu.vector_store %arg14[%c0_14, %c0_15], %21 {strides = array<i32>} : memref<16x128xf32, #tpu.memory_space<vmem>>, vector<16x128xf32>,
    %c0_i32_16 = arith.constant 0 : i32
    %23 = arith.cmpi eq, %arg1, %c0_i32_16 : i32
    %24 = arith.extui %23 : i1 to i32
    %c0_i32_17 = arith.constant 0 : i32
    %25 = arith.cmpi ne, %24, %c0_i32_17 : i32
    scf.if %25 {
      %c0_18 = arith.constant 0 : index
      %c0_19 = arith.constant 0 : index
      %26 = vector.load %arg14[%c0_18, %c0_19] : memref<16x128xf32, #tpu.memory_space<vmem>>, vector<16x128xf32>
      %c0_20 = arith.constant 0 : index
      %c0_21 = arith.constant 0 : index
      %27 = vector.load %arg10[%c0_20, %c0_21] : memref<1x128xf32, #tpu.memory_space<vmem>>, vector<1x128xf32>
      %28 = vector.broadcast %27 : vector<1x128xf32> to vector<16x128xf32>
      %29 = arith.addf %26, %28 : vector<16x128xf32>
      %c0_22 = arith.constant 0 : index
      %c0_23 = arith.constant 0 : index
      %30 = vector.load %arg12[%c0_22, %c0_23] : memref<16x128xf32, #tpu.memory_space<vmem>>, vector<16x128xf32>
      %31 = arith.addf %29, %30 : vector<16x128xf32>
      %c0_24 = arith.constant 0 : index
      %c0_25 = arith.constant 0 : index
      %32 = vector.load %arg11[%c0_24, %c0_25] : memref<16x128xf32, #tpu.memory_space<vmem>>, vector<16x128xf32>
      tpu.vector_store %arg11[%c0_24, %c0_25], %31 {strides = array<i32>} : memref<16x128xf32, #tpu.memory_space<vmem>>, vector<16x128xf32>,
    } else {
    }
    return
  }
  func.func @transform_0(%arg0: i32, %arg1: i32) -> (i32, i32) {
    %c0_i32 = arith.constant 0 : i32
    %c0_i32_0 = arith.constant 0 : i32
    return %arg0, %c0_i32 : i32, i32
  }
  func.func @transform_1(%arg0: i32, %arg1: i32) -> (i32, i32) {
    %c0_i32 = arith.constant 0 : i32
    %c0_i32_0 = arith.constant 0 : i32
    return %arg0, %c0_i32 : i32, i32
  }
  func.func @transform_2(%arg0: i32, %arg1: i32) -> (i32, i32) {
    %c0_i32 = arith.constant 0 : i32
    %c0_i32_0 = arith.constant 0 : i32
    %c0_i32_1 = arith.constant 0 : i32
    return %c0_i32, %c0_i32_0 : i32, i32
  }
  func.func @transform_3(%arg0: i32, %arg1: i32) -> (i32, i32) {
    %c0_i32 = arith.constant 0 : i32
    %c0_i32_0 = arith.constant 0 : i32
    %c0_i32_1 = arith.constant 0 : i32
    return %c0_i32, %c0_i32_0 : i32, i32
  }
  func.func @transform_4(%arg0: i32, %arg1: i32) -> (i32, i32) {
    %c0_i32 = arith.constant 0 : i32
    %c0_i32_0 = arith.constant 0 : i32
    %c0_i32_1 = arith.constant 0 : i32
    return %c0_i32, %c0_i32_0 : i32, i32
  }
  func.func @transform_5(%arg0: i32, %arg1: i32) -> (i32, i32) {
    %c0_i32 = arith.constant 0 : i32
    %c0_i32_0 = arith.constant 0 : i32
    return %c0_i32, %arg1 : i32, i32
  }
  func.func @transform_6(%arg0: i32, %arg1: i32) -> (i32, i32) {
    %c0_i32 = arith.constant 0 : i32
    %c0_i32_0 = arith.constant 0 : i32
    return %c0_i32, %arg1 : i32, i32
  }
  func.func @transform_7(%arg0: i32, %arg1: i32) -> (i32, i32) {
    %c0_i32 = arith.constant 0 : i32
    %c0_i32_0 = arith.constant 0 : i32
    return %arg1, %c0_i32 : i32, i32
  }
  func.func @transform_8(%arg0: i32, %arg1: i32) -> (i32, i32) {
    %c0_i32 = arith.constant 0 : i32
    %c0_i32_0 = arith.constant 0 : i32
    %c0_i32_1 = arith.constant 0 : i32
    return %c0_i32, %c0_i32_0 : i32, i32
  }
  func.func @transform_9(%arg0: i32, %arg1: i32) -> (i32, i32) {
    %c0_i32 = arith.constant 0 : i32
    %c0_i32_0 = arith.constant 0 : i32
    return %arg0, %c0_i32 : i32, i32
  }
}

</mosaic_0001>

<bundles_post_ra>
// kernel: tpu_custom_call.1
= control target key start
LH: loop header
LB: loop body
LE: loop exit
PB: predicated region body
PF: predicated region fallthrough
CT: control target
= control target key end

     0   :  { %14 = vsyncpa [#allocation6], 0  ;;  %s2245_s0 = inlined_call_operand.hbm [shape: f32[16,128], index: 0, kind: input, shape index: {}]   ;;  %s2246_s1 = inlined_call_operand.hbm [shape: f32[16,128], index: 1, kind: input, shape index: {}]   ;;  %s2247_s2 = inlined_call_operand.vmem [shape: f32[1,128], index: 2, kind: input, shape index: {}]   ;;  %s2248_s3 = inlined_call_operand.hbm [shape: f32[1,128], index: 3, kind: input, shape index: {}]   ;;  %s2249_s4 = inlined_call_operand.hbm [shape: f32[1,128], index: 4, kind: input, shape index: {}]   ;;  %s2250_s5 = inlined_call_operand.hbm [shape: bf16[128,512], index: 5, kind: input, shape index: {}]   ;;  %s2251_s6 = inlined_call_operand.vmem [shape: f32[1,512], index: 6, kind: input, shape index: {}]   ;;  %s2252_s7 = inlined_call_operand.hbm [shape: bf16[512,128], index: 7, kind: input, shape index: {}]   ;;  %s2253_s8 = inlined_call_operand.vmem [shape: f32[1,128], index: 8, kind: input, shape index: {}]   ;;  %s2254_s9 = inlined_call_operand.hbm [shape: f32[16,128], index: 9, kind: output, shape index: {}]  }
   0x1   :  { %15 = vsyncpa [#allocation9], 0 }
   0x2   :  { %16 = vsyncpa [#allocation12], 0 }
   0x3   :  { %17 = vsyncpa [#allocation15], 0 }
   0x4   :  { %18 = vsyncpa [#allocation7], 0  ;;  %s36_s11 = sshll.u32 %s2246_s1, 4  ;;  %s1741_s12 = smov [#allocation8]   ;;  %s37_s11 = int_to_ptr.hbm [resolvable:$true] %s36_s11 }
   0x5   :  { %s38_s13 = sshll.u32 %s1741_s12, 4  ;;  %s63_s16 = sshll.u32 %s2249_s4, 4  ;;  %s39_s13 = int_to_ptr.vmem [resolvable:$true] %s38_s13  ;;  %s64_s16 = int_to_ptr.hbm [resolvable:$true] %s63_s16 }
   0x6   :  { %s1742_s17 = smov 128   ;;  %s1743_s18 = smov 8  }
   0x7   :  { %44 = dma.hbm_to_vmem [thread:$0]  %s37_s11, 256, %s39_s13, [#allocation9], %s1742_s17, %s1742_s17, %s1743_s18  }
   0x8   :  { %s1744_s19 = smov [#allocation11]   ;;  %s23_s1 = sshll.u32 %s2245_s0, 4  ;;  %s24_s1 = int_to_ptr.hbm [resolvable:$true] %s23_s1 }
   0x9   :  { %s65_s20 = sshll.u32 %s1744_s19, 4  ;;  %s52_s4 = sshll.u32 %s2248_s3, 4  ;;  %s66_s20 = int_to_ptr.vmem [resolvable:$true] %s65_s20  ;;  %s53_s4 = int_to_ptr.hbm [resolvable:$true] %s52_s4 }
   0xa   :  { %68 = dma.hbm_to_vmem [thread:$0]  %s64_s16, 16, %s66_s20, [#allocation12]  }
   0xb   :  { %s1745_s25 = smov [#allocation5]   ;;  %s1746_s27 = smov [#allocation10]  }
   0xc   :  { %s25_s26 = sshll.u32 %s1745_s25, 4  ;;  %s54_s28 = sshll.u32 %s1746_s27, 4  ;;  %s26_s26 = int_to_ptr.vmem [resolvable:$true] %s25_s26  ;;  %s55_s28 = int_to_ptr.vmem [resolvable:$true] %s54_s28 }
   0xd   :  { %31 = dma.hbm_to_vmem [thread:$0]  %s24_s1, 256, %s26_s26, [#allocation6], %s1742_s17, %s1742_s17, %s1743_s18  }
   0xe   :  { %s73_s0 = sshll.u32 %s2250_s5, 4  ;;  %s1747_s10 = smov [#allocation13]   ;;  %s74_s0 = int_to_ptr.hbm [resolvable:$true] %s73_s0 }
   0xf   :  { %57 = dma.hbm_to_vmem [thread:$0]  %s53_s4, 16, %s55_s28, [#allocation9]  }
  0x10   :  { %s75_s11 = sshll.u32 %s1747_s10, 4  ;;  %s88_s13 = sshll.u32 %s2252_s7, 4  ;;  %s76_s11 = int_to_ptr.vmem [resolvable:$true] %s75_s11  ;;  %s89_s13 = int_to_ptr.hbm [resolvable:$true] %s88_s13 }
  0x11   :  { %s1748_s14 = smov 256   ;;  %s1749_s15 = smov 16  }
  0x12   :  { %81 = dma.hbm_to_vmem [thread:$0]  %s74_s0, 4096, %s76_s11, [#allocation12], %s1748_s14, %s1748_s14, %s1749_s15  }
  0x13   :  { %s1750_s16 = smov [#allocation14]   ;;  %s1751_s20 = smov 64  }
  0x14   :  { %s90_s19 = sshll.u32 %s1750_s16, 4  ;;  %s1752_s21 = smov 4   ;;  %s91_s19 = int_to_ptr.vmem [resolvable:$true] %s90_s19 }
  0x15   :  { %96 = dma.hbm_to_vmem [thread:$0]  %s89_s13, 4096, %s91_s19, [#allocation15], %s1751_s20, %s1751_s20, %s1752_s21  }
  0x16   :  { %1731 = dma.done.wait [#allocation6], 256  }
  0x17   :  { %1732 = vsyncadd [#allocation6], 4294967040 }
  0x18   :  { %1733 = dma.done.wait [#allocation9], 272  }
  0x19   :  { %1734 = vsyncadd [#allocation9], 4294967024 }
  0x1a   :  { %1735 = dma.done.wait [#allocation12], 4112  }
  0x1b   :  { %1736 = vsyncadd [#allocation12], 4294963184 }
  0x1c   :  { %1737 = dma.done.wait [#allocation15], 4096  }
  0x1d   :  { %1738 = vsyncadd [#allocation15], 4294963200  ;;  %v127_v0 = vld [vmem:[#allocation5] sm:$0xff]  ;;  %v129_v1 = vld [vmem:[#allocation8] sm:$0xff]  ;;  %v1753_v9 = vmov 128.0   ;;  %s1754_s23 = smov [#allocation16]  }
  0x1e   :  { %v131_v2 = vadd.f32 %v129_v1, %v127_v0  ;;  %v1537_v3 = vld [vmem:[%s2247_s2] ss:$0 sm:$0xff]  ;;  %v128_v4 = vld [vmem:[#allocation5 + $0x8] sm:$0xff]  ;;  %1541 = vrcp.f32 %v1753_v9  ;;  %v1303_v24 = vld [vmem:[#allocation13 + $0xe0] sm:$0xf]  ;;  %s1167_s24 = sshll.u32 %s1754_s23, 4  ;;  %s1168_s24 = int_to_ptr.vmem [resolvable:$true] %s1167_s24 }
  0x1f   :  { %v130_v5 = vld [vmem:[#allocation8 + $0x8] sm:$0xff]  ;;  %v1484_v25 = vld [vmem:[#allocation13 + $0xec] sm:$0xf0]  ;;  %v1482_v26 = vld [vmem:[#allocation13 + $0xe4] sm:$0xf]  ;;  %s1169_s26 = sshll.u32 %s2254_s9, 4  ;;  %s1170_s26 = int_to_ptr.hbm [resolvable:$true] %s1169_s26 }
  0x20   :  { %v1832_v6 = vadd.f32 %v1537_v3, %v131_v2  ;;  %v132_v7 = vadd.f32 %v130_v5, %v128_v4  ;;  %v1304_v27 = vor.u32 %v1484_v25, %v1303_v24  ;;  %v1305_v28 = vld [vmem:[#allocation13 + $0xf0] sm:$0xf0]  ;;  %v1311_v29 = vld [vmem:[#allocation13 + $0xe8] sm:$0xf]  ;;  %v1485_v30 = vld [vmem:[#allocation13 + $0xf4] sm:$0xf0] }
  0x21   :  { %v1308_v31 = vor.u32 %v1482_v26, %v1305_v28  ;;  %v1312_v32 = vor.u32 %v1485_v30, %v1311_v29  ;;  %v1483_v33 = vld [vmem:[#allocation13 + $0xec] sm:$0xf]  ;;  %v1313_v34 = vld [vmem:[#allocation13 + $0xf8] sm:$0xf0]  ;;  %v1287_v36 = vld [vmem:[#allocation13 + $0xc0] sm:$0xf] }
  0x22   :  { %139 = vadd.xlane.f32.xlu0 %v1832_v6  ;;  %v1835_v8 = vadd.f32 %v1537_v3, %v132_v7  ;;  %416 = vmatpush.bf16.msra.mxu0 %v1304_v27  ;;  %v1316_v35 = vor.u32 %v1483_v33, %v1313_v34  ;;  %v1480_v37 = vld [vmem:[#allocation13 + $0xcc] sm:$0xf0]  ;;  %v1478_v38 = vld [vmem:[#allocation13 + $0xc4] sm:$0xf]  ;;  %v1289_v40 = vld [vmem:[#allocation13 + $0xd0] sm:$0xf0] }
  0x23   :  { %430 = vmatpush.bf16.msra.mxu1 %v1308_v31  ;;  %444 = vmatpush.bf16.msra.mxu2 %v1312_v32  ;;  %v1288_v39 = vor.u32 %v1480_v37, %v1287_v36  ;;  %v1295_v41 = vld [vmem:[#allocation13 + $0xc8] sm:$0xf]  ;;  %v1481_v42 = vld [vmem:[#allocation13 + $0xd4] sm:$0xf0]  ;;  %v1292_v43 = vor.u32 %v1478_v38, %v1289_v40  ;;  %v1479_v45 = vld [vmem:[#allocation13 + $0xcc] sm:$0xf] }
  0x24   :  { %v1542_v10 = vpop.eup %1541  ;;  %458 = vmatpush.bf16.msra.mxu3 %v1316_v35  ;;  %v1296_v44 = vor.u32 %v1481_v42, %v1295_v41  ;;  %v1297_v46 = vld [vmem:[#allocation13 + $0xd8] sm:$0xf0]  ;;  %v1271_v48 = vld [vmem:[#allocation13 + $0xa0] sm:$0xf]  ;;  %v1476_v49 = vld [vmem:[#allocation13 + $0xac] sm:$0xf0] }
  0x25   :  { %v144_v11 = vmul.f32 128.0, %v1542_v10  ;;  %vm148_vm0 = vweird.f32 %v1542_v10  ;;  %v1300_v47 = vor.u32 %v1479_v45, %v1297_v46  ;;  %v1474_v50 = vld [vmem:[#allocation13 + $0xa4] sm:$0xf]  ;;  %v1272_v51 = vor.u32 %v1476_v49, %v1271_v48  ;;  %v1273_v52 = vld [vmem:[#allocation13 + $0xb0] sm:$0xf0] }
  0x26   :  { %417 = vmatpush.bf16.msra.mxu0 %v1288_v39  ;;  %v1279_v53 = vld [vmem:[#allocation13 + $0xa8] sm:$0xf]  ;;  %v1477_v54 = vld [vmem:[#allocation13 + $0xb4] sm:$0xf0]  ;;  %v1276_v55 = vor.u32 %v1474_v50, %v1273_v52  ;;  %v1475_v57 = vld [vmem:[#allocation13 + $0xac] sm:$0xf] }
  0x27   :  { %v145_v12 = vsub.f32 1.0, %v144_v11  ;;  %431 = vmatpush.bf16.msra.mxu1 %v1292_v43  ;;  %445 = vmatpush.bf16.msra.mxu2 %v1296_v44  ;;  %v1280_v56 = vor.u32 %v1477_v54, %v1279_v53  ;;  %v1281_v58 = vld [vmem:[#allocation13 + $0xb8] sm:$0xf0]  ;;  %v1255_v60 = vld [vmem:[#allocation13 + $0x80] sm:$0xf] }
  0x28   :  { %459 = vmatpush.bf16.msra.mxu3 %v1300_v47  ;;  %v1284_v59 = vor.u32 %v1475_v57, %v1281_v58  ;;  %v1472_v61 = vld [vmem:[#allocation13 + $0x8c] sm:$0xf0]  ;;  %v1470_v62 = vld [vmem:[#allocation13 + $0x84] sm:$0xf]  ;;  %v1257_v0 = vld [vmem:[#allocation13 + $0x90] sm:$0xf0] }
  0x29   :  { %v146_v13 = vmul.f32 %v1542_v10, %v145_v12  ;;  %v1256_v63 = vor.u32 %v1472_v61, %v1255_v60  ;;  %v1263_v1 = vld [vmem:[#allocation13 + $0x88] sm:$0xf]  ;;  %v1473_v2 = vld [vmem:[#allocation13 + $0x94] sm:$0xf0]  ;;  %v1260_v3 = vor.u32 %v1470_v62, %v1257_v0  ;;  %v1471_v5 = vld [vmem:[#allocation13 + $0x8c] sm:$0xf] }
  0x2a   :  { %141 = vadd.xlane.f32.xlu0 %v1835_v8  ;;  %418 = vmatpush.bf16.msra.mxu0 %v1272_v51  ;;  %v1264_v4 = vor.u32 %v1473_v2, %v1263_v1  ;;  %v1265_v7 = vld [vmem:[#allocation13 + $0x98] sm:$0xf0]  ;;  %v1468_v11 = vld [vmem:[#allocation13 + $0x6c] sm:$0xf0]  ;;  %v1466_v12 = vld [vmem:[#allocation13 + $0x64] sm:$0xf] }
  0x2b   :  { %v147_v14 = vadd.f32 %v1542_v10, %v146_v13  ;;  %432 = vmatpush.bf16.msra.mxu1 %v1276_v55  ;;  %446 = vmatpush.bf16.msra.mxu2 %v1280_v56  ;;  %v1268_v9 = vor.u32 %v1471_v5, %v1265_v7  ;;  %v1249_v24 = vld [vmem:[#allocation13 + $0x78] sm:$0xf0]  ;;  %v1223_v27 = vld [vmem:[#allocation13 + $0x40] sm:$0xf]  ;;  %v1464_v28 = vld [vmem:[#allocation13 + $0x4c] sm:$0xf0] }
  0x2c   :  { %460 = vmatpush.bf16.msra.mxu3 %v1284_v59  ;;  %v1462_v29 = vld [vmem:[#allocation13 + $0x44] sm:$0xf]  ;;  %v1224_v31 = vor.u32 %v1464_v28, %v1223_v27  ;;  %v1225_v32 = vld [vmem:[#allocation13 + $0x50] sm:$0xf0]  ;;  %v1231_v33 = vld [vmem:[#allocation13 + $0x48] sm:$0xf] }
  0x2d   :  { %v1838_v15 = vsel %vm148_vm0, %v1542_v10, %v147_v14  ;;  %v1239_v10 = vld [vmem:[#allocation13 + $0x60] sm:$0xf]  ;;  %v1241_v14 = vld [vmem:[#allocation13 + $0x70] sm:$0xf0]  ;;  %v1228_v34 = vor.u32 %v1462_v29, %v1225_v32  ;;  %v1465_v35 = vld [vmem:[#allocation13 + $0x54] sm:$0xf0] }
  0x2e   :  { %419 = vmatpush.bf16.msra.mxu0 %v1256_v63  ;;  %v1240_v13 = vor.u32 %v1468_v11, %v1239_v10  ;;  %v1463_v36 = vld [vmem:[#allocation13 + $0x4c] sm:$0xf]  ;;  %v1233_v37 = vld [vmem:[#allocation13 + $0x58] sm:$0xf0]  ;;  %v1232_v38 = vor.u32 %v1465_v35, %v1231_v33  ;;  %v1207_v40 = vld [vmem:[#allocation13 + $0x20] sm:$0xf] }
  0x2f   :  { %433 = vmatpush.bf16.msra.mxu1 %v1260_v3  ;;  %447 = vmatpush.bf16.msra.mxu2 %v1264_v4  ;;  %v1236_v39 = vor.u32 %v1463_v36, %v1233_v37  ;;  %v1460_v41 = vld [vmem:[#allocation13 + $0x2c] sm:$0xf0]  ;;  %v1458_v42 = vld [vmem:[#allocation13 + $0x24] sm:$0xf]  ;;  %v1209_v44 = vld [vmem:[#allocation13 + $0x30] sm:$0xf0] }
  0x30   :  { %461 = vmatpush.bf16.msra.mxu3 %v1268_v9  ;;  %v1208_v43 = vor.u32 %v1460_v41, %v1207_v40  ;;  %v1215_v45 = vld [vmem:[#allocation13 + $0x28] sm:$0xf]  ;;  %v1461_v46 = vld [vmem:[#allocation13 + $0x34] sm:$0xf0]  ;;  %v1212_v48 = vor.u32 %v1458_v42, %v1209_v44  ;;  %v1459_v50 = vld [vmem:[#allocation13 + $0x2c] sm:$0xf] }
  0x31   :  { %v1216_v49 = vor.u32 %v1461_v46, %v1215_v45  ;;  %v1217_v51 = vld [vmem:[#allocation13 + $0x38] sm:$0xf0]  ;;  %v1191_v52 = vld [vmem:[#allocation13] sm:$0xf]  ;;  %v1456_v55 = vld [vmem:[#allocation13 + $0xc] sm:$0xf0] }
  0x32   :  { %420 = vmatpush.bf16.msra.mxu0 %v1240_v13  ;;  %v1220_v54 = vor.u32 %v1459_v50, %v1217_v51  ;;  %v1454_v56 = vld [vmem:[#allocation13 + $0x4] sm:$0xf]  ;;  %v1193_v57 = vld [vmem:[#allocation13 + $0x10] sm:$0xf0]  ;;  %v1192_v58 = vor.u32 %v1456_v55, %v1191_v52  ;;  %v1199_v60 = vld [vmem:[#allocation13 + $0x8] sm:$0xf] }
  0x33   :  { %v1196_v59 = vor.u32 %v1454_v56, %v1193_v57  ;;  %v1457_v61 = vld [vmem:[#allocation13 + $0x14] sm:$0xf0]  ;;  %v1455_v62 = vld [vmem:[#allocation13 + $0xc] sm:$0xf]  ;;  %v1201_v2 = vld [vmem:[#allocation13 + $0x18] sm:$0xf0] }
  0x34   :  { %v1200_v1 = vor.u32 %v1457_v61, %v1199_v60 }
  0x36   :  { %421 = vmatpush.bf16.msra.mxu0 %v1224_v31 }
  0x3a   :  { %422 = vmatpush.bf16.msra.mxu0 %v1208_v43 }
  0x3e   :  { %423 = vmatpush.bf16.msra.mxu0 %v1192_v58 }
  0x95   :  { %v140_v16 = vpop.xlane.xlu0 %139 }
  0x96   :  { %v150_v17 = vmul.f32 %v1838_v15, %v140_v16  ;;  %v1247_v16 = vld [vmem:[#allocation13 + $0x68] sm:$0xf] }
  0x98   :  { %v1842_v18 = vsub.f32 %v1832_v6, %v150_v17  ;;  %v1469_v17 = vld [vmem:[#allocation13 + $0x74] sm:$0xf0] }
  0x9a   :  { %v154_v19 = vmul.f32 %v1842_v18, %v1842_v18 }
  0x9c   :  { %156 = vadd.xlane.f32.xlu1 %v154_v19 }
  0x9d   :  { %v142_v20 = vpop.xlane.xlu0 %141 }
  0x9e   :  { %v151_v21 = vmul.f32 %v1838_v15, %v142_v20  ;;  %v1244_v20 = vor.u32 %v1466_v12, %v1241_v14 }
  0xa0   :  { %v1848_v22 = vsub.f32 %v1835_v8, %v151_v21  ;;  %v1248_v21 = vor.u32 %v1469_v17, %v1247_v16  ;;  %434 = vmatpush.bf16.msra.mxu1 %v1244_v20  ;;  %v1538_v17 = vld [vmem:[#allocation10] ss:$0 sm:$0xff] }
  0xa2   :  { %v155_v23 = vmul.f32 %v1848_v22, %v1848_v22  ;;  %448 = vmatpush.bf16.msra.mxu2 %v1248_v21 }
  0xa4   :  { %158 = vadd.xlane.f32.xlu1 %v155_v23  ;;  %v1467_v23 = vld [vmem:[#allocation13 + $0x6c] sm:$0xf]  ;;  %435 = vmatpush.bf16.msra.mxu1 %v1228_v34 }
  0xa5   :  { %v1252_v26 = vor.u32 %v1467_v23, %v1249_v24  ;;  %v1539_v23 = vld [vmem:[#allocation11] ss:$0 sm:$0xff] }
  0xa6   :  { %449 = vmatpush.bf16.msra.mxu2 %v1232_v38 }
  0xa7   :  { %462 = vmatpush.bf16.msra.mxu3 %v1252_v26 }
  0xa8   :  { %436 = vmatpush.bf16.msra.mxu1 %v1212_v48 }
  0xaa   :  { %450 = vmatpush.bf16.msra.mxu2 %v1216_v49 }
  0xab   :  { %463 = vmatpush.bf16.msra.mxu3 %v1236_v39 }
  0xac   :  { %437 = vmatpush.bf16.msra.mxu1 %v1196_v59 }
  0xae   :  { %451 = vmatpush.bf16.msra.mxu2 %v1200_v1 }
  0xaf   :  { %464 = vmatpush.bf16.msra.mxu3 %v1220_v54 }
 0x10f   :  { %v157_v19 = vpop.xlane.xlu1 %156 }
 0x110   :  { %v160_v25 = vmul.f32 %v157_v19, %v1838_v15 }
 0x112   :  { %v1853_v30 = vadd.f32 1e-05, %v160_v25 }
 0x114   :  { %1543 = vrsqrt.f32 %v1853_v30  ;;  %vm170_vm2 = vweird.f32 %v1853_v30 }
 0x117   :  { %v159_v47 = vpop.xlane.xlu1 %158 }
 0x118   :  { %v161_v53 = vmul.f32 %v159_v47, %v1838_v15  ;;  %v1204_v15 = vor.u32 %v1455_v62, %v1201_v2 }
 0x11a   :  { %v1544_v63 = vpop.eup %1543  ;;  %v163_v0 = vadd.f32 1e-05, %v161_v53  ;;  %465 = vmatpush.bf16.msra.mxu3 %v1204_v15 }
 0x11b   :  { %v165_v3 = vmul.f32 %v1544_v63, %v1853_v30  ;;  %vm171_vm1 = vweird.f32 %v1544_v63 }
 0x11c   :  { %1545 = vrsqrt.f32 %v163_v0  ;;  %vm172_vm3 = vmor %vm170_vm2, %vm171_vm1  ;;  %vm180_vm5 = vweird.f32 %v163_v0 }
 0x11d   :  { %v166_v4 = vmul.f32 %v1544_v63, %v165_v3 }
 0x11f   :  { %v167_v5 = vmul.f32 0.5, %v166_v4 }
 0x121   :  { %v168_v7 = vsub.f32 1.5, %v167_v5 }
 0x122   :  { %v1546_v9 = vpop.eup %1545 }
 0x123   :  { %v169_v10 = vmul.f32 %v1544_v63, %v168_v7  ;;  %v175_v11 = vmul.f32 %v1546_v9, %v163_v0  ;;  %vm181_vm4 = vweird.f32 %v1546_v9 }
 0x124   :  { %vm182_vm6 = vmor %vm180_vm5, %vm181_vm4 }
 0x125   :  { %v176_v12 = vmul.f32 %v1546_v9, %v175_v11  ;;  %v173_v13 = vsel %vm172_vm3, %v1544_v63, %v169_v10 }
 0x126   :  { %v184_v19 = vmul.f32 %v173_v13, %v1842_v18  ;;  %v1864_v18 = vld [vmem:[%s2251_s6] sm:$0xf] }
 0x127   :  { %v177_v14 = vmul.f32 0.5, %v176_v12  ;;  %v242_v31 = vperm.slane %v1864_v18, 0  ;;  %v243_v32 = vperm.slane %v1864_v18, 1  ;;  %v244_v38 = vperm.slane %v1864_v18, 2 }
 0x128   :  { %v190_v24 = vmul.f32 %v1538_v17, %v184_v19  ;;  %v245_v45 = vperm.slane %v1864_v18, 3  ;;  %v1490_v18 = vld [vmem:[#allocation14 + $0x20] sm:$0xff] }
 0x129   :  { %v178_v16 = vsub.f32 1.5, %v177_v14 }
 0x12a   :  { %v196_v27 = vadd.f32 %v1539_v23, %v190_v24 }
 0x12b   :  { %v179_v20 = vmul.f32 %v1546_v9, %v178_v16 }
 0x12d   :  { %v183_v21 = vsel %vm182_vm6, %v1546_v9, %v179_v20 }
 0x12e   :  { %v185_v25 = vmul.f32 %v183_v21, %v1848_v22 }
 0x130   :  { %v191_v26 = vmul.f32 %v1538_v17, %v185_v25 }
 0x132   :  { %v197_v28 = vadd.f32 %v1539_v23, %v191_v26 }
 0x134   :  { %v1521_v29 = vpack.c.bf16 %v197_v28, %v196_v27 }
 0x136   :  { %1522 = vst [vmem:[#allocation3] sm:$0xff] %v1521_v29  }
 0x13d   :  { %v1453_v30 = vld [vmem:[#allocation3] sm:$0xff] }
 0x13e   :  { %424 = vmatmul.bf16.vlgmr.msra.gmra.mxu0 %v1453_v30  ;;  %438 = vmatmul.bf16.vlgmr.msra.gmra.mxu1 %v1453_v30 }
 0x13f   :  { %452 = vmatmul.bf16.vlgmr.msra.gmra.mxu2 %v1453_v30  ;;  %466 = vmatmul.bf16.vlgmr.msra.gmra.mxu3 %v1453_v30 }
 0x1bb   :  { %v425_v22 = vpop.f32.mrf.mxu0  ;;  %v439_v33 = vpop.f32.mrf.mxu1 }
 0x1bc   :  { %v1868_v34 = vadd.f32 %v425_v22, %v242_v31  ;;  %v1872_v35 = vadd.f32 %v439_v33, %v243_v32 }
 0x1be   :  { %v1875_v36 = vmul.f32 0.70710677, %v1868_v34  ;;  %v1878_v37 = vmul.f32 0.70710677, %v1872_v35 }
 0x1c0   :  { %v488_v39 = vmul.f32 %v1875_v36, %v1875_v36  ;;  %v528_v40 = vmul.f32 %v1878_v37, %v1878_v37 }
 0x1c2   :  { %v1885_v41 = vmin.f32 %v488_v39, 16.0  ;;  %v1887_v42 = vmin.f32 %v528_v40, 16.0  ;;  %v453_v43 = vpop.f32.mrf.mxu2  ;;  %v467_v47 = vpop.f32.mrf.mxu3 }
 0x1c3   :  { %v1891_v44 = vadd.f32 %v453_v43, %v244_v38  ;;  %v1905_v55 = vadd.f32 %v467_v47, %v245_v45  ;;  %v427_v2 = vpop.f32.mrf.mxu0 }
 0x1c4   :  { %v501_v46 = vmul.f32 3.8918573e-05, %v1885_v41  ;;  %v490_v48 = vmul.f32 2.1237322e-06, %v1885_v41  ;;  %v541_v49 = vmul.f32 3.8918573e-05, %v1887_v42  ;;  %v1921_v10 = vadd.f32 %v427_v2, %v242_v31 }
 0x1c5   :  { %v1898_v50 = vmul.f32 0.70710677, %v1891_v44  ;;  %v530_v52 = vmul.f32 2.1237322e-06, %v1887_v42  ;;  %v1913_v0 = vmul.f32 0.70710677, %v1905_v55 }
 0x1c6   :  { %v502_v51 = vadd.f32 0.001143296, %v501_v46  ;;  %v542_v53 = vadd.f32 0.001143296, %v541_v49  ;;  %v491_v57 = vadd.f32 0.00028619796, %v490_v48  ;;  %v441_v46 = vpop.f32.mrf.mxu1 }
 0x1c7   :  { %v568_v54 = vmul.f32 %v1898_v50, %v1898_v50  ;;  %v531_v61 = vadd.f32 0.00028619796, %v530_v52  ;;  %v608_v9 = vmul.f32 %v1913_v0, %v1913_v0  ;;  %v1929_v21 = vmul.f32 0.70710677, %v1921_v10 }
 0x1c8   :  { %v503_v56 = vmul.f32 %v502_v51, %v1885_v41  ;;  %v543_v58 = vmul.f32 %v542_v53, %v1887_v42  ;;  %v492_v3 = vmul.f32 %v491_v57, %v1885_v41  ;;  %v442_v53 = vadd.f32 %v441_v46, %v243_v32 }
 0x1c9   :  { %v1909_v59 = vmin.f32 %v568_v54, 16.0  ;;  %v532_v7 = vmul.f32 %v531_v61, %v1887_v42  ;;  %v1926_v20 = vmin.f32 %v608_v9, 16.0  ;;  %v648_v31 = vmul.f32 %v1929_v21, %v1929_v21 }
 0x1ca   :  { %v504_v60 = vadd.f32 0.014752088, %v503_v56  ;;  %v544_v62 = vadd.f32 0.014752088, %v543_v58  ;;  %v493_v13 = vadd.f32 0.0036580483, %v492_v3  ;;  %v455_v32 = vpop.f32.mrf.mxu2 }
 0x1cb   :  { %v581_v63 = vmul.f32 3.8918573e-05, %v1909_v59  ;;  %v533_v17 = vadd.f32 0.0036580483, %v532_v7  ;;  %v570_v19 = vmul.f32 2.1237322e-06, %v1909_v59 }
 0x1cc   :  { %v505_v1 = vmul.f32 %v504_v60, %v1885_v41  ;;  %v545_v15 = vmul.f32 %v544_v62, %v1887_v42  ;;  %v494_v26 = vmul.f32 %v493_v13, %v1885_v41  ;;  %v621_v30 = vmul.f32 3.8918573e-05, %v1926_v20 }
 0x1cd   :  { %v582_v4 = vadd.f32 0.001143296, %v581_v63  ;;  %v534_v27 = vmul.f32 %v533_v17, %v1887_v42  ;;  %v571_v28 = vadd.f32 0.00028619796, %v570_v19  ;;  %v1943_v48 = vmin.f32 %v648_v31, 16.0 }
 0x1ce   :  { %v506_v5 = vadd.f32 0.112945676, %v505_v1  ;;  %v546_v12 = vadd.f32 0.112945676, %v545_v15  ;;  %v495_v39 = vadd.f32 0.05243302, %v494_v26 }
 0x1cf   :  { %v583_v14 = vmul.f32 %v582_v4, %v1909_v59  ;;  %v535_v40 = vadd.f32 0.05243302, %v534_v27  ;;  %v572_v43 = vmul.f32 %v571_v28, %v1909_v59  ;;  %v622_v47 = vadd.f32 0.001143296, %v621_v30 }
 0x1d0   :  { %v507_v11 = vmul.f32 %v506_v5, %v1885_v41  ;;  %v547_v24 = vmul.f32 %v546_v12, %v1887_v42  ;;  %v610_v51 = vmul.f32 2.1237322e-06, %v1926_v20  ;;  %v496_v54 = vmul.f32 %v495_v39, %v1885_v41 }
 0x1d1   :  { %v584_v25 = vadd.f32 0.014752088, %v583_v14  ;;  %v536_v56 = vmul.f32 %v535_v40, %v1887_v42  ;;  %v573_v57 = vadd.f32 0.0036580483, %v572_v43  ;;  %v623_v58 = vmul.f32 %v622_v47, %v1926_v20 }
 0x1d2   :  { %v508_v16 = vadd.f32 0.4994258, %v507_v11  ;;  %v548_v22 = vadd.f32 0.4994258, %v547_v24  ;;  %v650_v60 = vmul.f32 2.1237322e-06, %v1943_v48  ;;  %v1968_v14 = vadd.f32 %v455_v32, %v244_v38 }
 0x1d3   :  { %v585_v33 = vmul.f32 %v584_v25, %v1909_v59  ;;  %v661_v61 = vmul.f32 3.8918573e-05, %v1943_v48  ;;  %v611_v63 = vadd.f32 0.00028619796, %v610_v51  ;;  %v1959_v3 = vmul.f32 0.70710677, %v442_v53 }
 0x1d4   :  { %v509_v23 = vmul.f32 %v508_v16, %v1885_v41  ;;  %v549_v49 = vmul.f32 %v548_v22, %v1887_v42  ;;  %v497_v15 = vadd.f32 0.18741608, %v496_v54  ;;  %v537_v4 = vadd.f32 0.18741608, %v536_v56 }
 0x1d5   :  { %v586_v52 = vadd.f32 0.112945676, %v585_v33  ;;  %v574_v5 = vmul.f32 %v573_v57, %v1909_v59  ;;  %v624_v7 = vadd.f32 0.014752088, %v623_v58  ;;  %v651_v9 = vadd.f32 0.00028619796, %v650_v60 }
 0x1d6   :  { %v1935_v29 = vadd.f32 1.0, %v509_v23  ;;  %v1954_v62 = vadd.f32 1.0, %v549_v49  ;;  %v662_v11 = vadd.f32 0.001143296, %v661_v61  ;;  %v612_v13 = vmul.f32 %v611_v63, %v1926_v20 }
 0x1d7   :  { %v587_v2 = vmul.f32 %v586_v52, %v1909_v59  ;;  %v652_v17 = vmul.f32 %v651_v9, %v1943_v48  ;;  %v688_v23 = vmul.f32 %v1959_v3, %v1959_v3  ;;  %v498_v24 = vmul.f32 %v497_v15, %v1885_v41 }
 0x1d8   :  { %1547 = vrcp.f32 %v1935_v29  ;;  %v663_v19 = vmul.f32 %v662_v11, %v1943_v48  ;;  %v575_v25 = vadd.f32 0.05243302, %v574_v5  ;;  %v538_v26 = vmul.f32 %v537_v4, %v1887_v42  ;;  %v1493_v4 = vld [vmem:[#allocation14 + $0x38] sm:$0xff] }
 0x1d9   :  { %1549 = vrcp.f32 %v1954_v62  ;;  %v588_v16 = vadd.f32 0.4994258, %v587_v2  ;;  %v625_v27 = vmul.f32 %v624_v7, %v1926_v20  ;;  %v1977_v30 = vmin.f32 %v688_v23, 16.0  ;;  %v1501_v5 = vld [vmem:[#allocation14 + $0x78] sm:$0xff]  ;;  %1086 = vmatpush.bf16.msrb.mxu0 %v1493_v4 }
 0x1da   :  { %v664_v28 = vadd.f32 0.014752088, %v663_v19  ;;  %v653_v31 = vadd.f32 0.0036580483, %v652_v17  ;;  %v1980_v22 = vmul.f32 0.70710677, %v1968_v14  ;;  %v576_v46 = vmul.f32 %v575_v25, %v1909_v59  ;;  %1100 = vmatpush.bf16.msrb.mxu1 %v1501_v5 }
 0x1db   :  { %v1983_v33 = vmul.f32 0.5, %v1868_v34  ;;  %v1986_v39 = vmul.f32 0.5, %v1872_v35  ;;  %v589_v41 = vmul.f32 %v588_v16, %v1909_v59  ;;  %v613_v40 = vadd.f32 0.0036580483, %v612_v13 }
 0x1dc   :  { %v499_v43 = vadd.f32 1.1283791, %v498_v24  ;;  %v665_v47 = vmul.f32 %v664_v28, %v1943_v48  ;;  %v690_v49 = vmul.f32 2.1237322e-06, %v1977_v30  ;;  %v1994_v51 = vadd.f32 1.1283791, %v538_v26 }
 0x1dd   :  { %v626_v52 = vadd.f32 0.112945676, %v625_v27  ;;  %v1997_v34 = vmul.f32 0.5, %v1921_v10  ;;  %v1999_v35 = vmul.f32 0.5, %v442_v53  ;;  %v520_v56 = vand.u32 2147483647, %v1935_v29 }
 0x1de   :  { %v1956_v1 = vpop.eup %1547  ;;  %v654_v57 = vmul.f32 %v653_v31, %v1943_v48  ;;  %v728_v58 = vmul.f32 %v1980_v22, %v1980_v22  ;;  %v2006_v60 = vadd.f32 1.0, %v589_v41  ;;  %v614_v61 = vmul.f32 %v613_v40, %v1926_v20  ;;  %v1492_v27 = vld [vmem:[#allocation14 + $0x30] sm:$0xff] }
 0x1df   :  { %v512_v12 = vmul.f32 %v1956_v1, %v1935_v29  ;;  %v1989_v42 = vpop.eup %1549  ;;  %v666_v63 = vadd.f32 0.112945676, %v665_v47  ;;  %v691_v2 = vadd.f32 0.00028619796, %v690_v49  ;;  %v2010_v10 = vmul.f32 %v499_v43, %v1875_v36  ;;  %v1500_v28 = vld [vmem:[#allocation14 + $0x70] sm:$0xff]  ;;  %v1509_v43 = vld [vmem:[#allocation14 + $0xb8] sm:$0xff]  ;;  %1087 = vmatpush.bf16.msrb.mxu0 %v1492_v27 }
 0x1e0   :  { %v522_v53 = vand.u32 2147483648, %v1935_v29  ;;  %v552_v32 = vmul.f32 %v1989_v42, %v1954_v62  ;;  %v577_v15 = vadd.f32 0.18741608, %v576_v46  ;;  %vm517_vm7 = vweird.f32 %v1956_v1  ;;  %v1517_v46 = vld [vmem:[#allocation14 + $0xf8] sm:$0xff]  ;;  %1101 = vmatpush.bf16.msrb.mxu1 %v1500_v28  ;;  %1114 = vmatpush.bf16.msrb.mxu2 %v1509_v43  ;;  %v1507_v43 = vld [vmem:[#allocation14 + $0xa8] sm:$0xff] }
 0x1e1   :  { %v513_v38 = vsub.f32 1.0, %v512_v12  ;;  %v627_v7 = vmul.f32 %v626_v52, %v1926_v20  ;;  %v667_v9 = vmul.f32 %v666_v63, %v1943_v48  ;;  %v701_v11 = vmul.f32 3.8918573e-05, %v1977_v30  ;;  %1128 = vmatpush.bf16.msrb.mxu3 %v1517_v46 }
 0x1e2   :  { %v655_v36 = vadd.f32 0.05243302, %v654_v57  ;;  %v692_v13 = vmul.f32 %v691_v2, %v1977_v30  ;;  %v2021_v16 = vmin.f32 %v728_v58, 16.0  ;;  %1551 = vrcp.f32 %v2006_v60 }
 0x1e3   :  { %v514_v54 = vmul.f32 %v1956_v1, %v513_v38  ;;  %v615_v17 = vadd.f32 0.05243302, %v614_v61  ;;  %v668_v19 = vadd.f32 0.4994258, %v667_v9  ;;  %v702_v23 = vadd.f32 0.001143296, %v701_v11 }
 0x1e4   :  { %vm516_vm8 = vweird.f32 %v1935_v29  ;;  %vm2025_vm9 = vcmp.eq.f32.partialorder %v520_v56, 8.507059e+37  ;;  %v523_v25 = vor.u32 1.1754944e-38, %v522_v53  ;;  %v553_v26 = vsub.f32 1.0, %v552_v32  ;;  %v469_v56 = vpop.f32.mrf.mxu3  ;;  %v1508_v11 = vld [vmem:[#allocation14 + $0xb0] sm:$0xff] }
 0x1e5   :  { %v515_v12 = vadd.f32 %v1956_v1, %v514_v54  ;;  %vm2031_vm10 = vmor %vm516_vm8, %vm517_vm7  ;;  %v628_v31 = vadd.f32 0.4994258, %v627_v7  ;;  %v669_v41 = vmul.f32 %v668_v19, %v1943_v48  ;;  %v703_v40 = vmul.f32 %v702_v23, %v1977_v30  ;;  %1115 = vmatpush.bf16.msrb.mxu2 %v1508_v11  ;;  %v1506_v11 = vld [vmem:[#allocation14 + $0xa0] sm:$0xff] }
 0x1e6   :  { %v730_v29 = vmul.f32 2.1237322e-06, %v2021_v16  ;;  %vm556_vm11 = vweird.f32 %v1954_v62  ;;  %v578_v49 = vmul.f32 %v577_v15, %v1909_v59  ;;  %v656_v52 = vmul.f32 %v655_v36, %v1943_v48  ;;  %v1499_v15 = vld [vmem:[#allocation14 + $0x68] sm:$0xff] }
 0x1e7   :  { %v519_v47 = vsel %vm2031_vm10, %v1956_v1, %v515_v12  ;;  %v693_v54 = vadd.f32 0.0036580483, %v692_v13  ;;  %v616_v57 = vmul.f32 %v615_v17, %v1926_v20  ;;  %v2045_v58 = vadd.f32 1.0, %v669_v41  ;;  %v1491_v1 = vld [vmem:[#allocation14 + $0x28] sm:$0xff]  ;;  %v1516_v12 = vld [vmem:[#allocation14 + $0xf0] sm:$0xff]  ;;  %1102 = vmatpush.bf16.msrb.mxu1 %v1499_v15 }
 0x1e8   :  { %v704_v61 = vadd.f32 0.014752088, %v703_v40  ;;  %v741_v63 = vmul.f32 3.8918573e-05, %v2021_v16  ;;  %v554_v2 = vmul.f32 %v1989_v42, %v553_v26  ;;  %v560_v59 = vand.u32 2147483647, %v1954_v62  ;;  %v2051_v4 = vpop.eup %1551  ;;  %1088 = vmatpush.bf16.msrb.mxu0 %v1491_v1  ;;  %1129 = vmatpush.bf16.msrb.mxu3 %v1516_v12 }
 0x1e9   :  { %v562_v53 = vand.u32 2147483648, %v1954_v62  ;;  %v731_v32 = vadd.f32 0.00028619796, %v730_v29  ;;  %v524_v5 = vsel %vm2025_vm9, %v523_v25, %v519_v47  ;;  %v629_v7 = vmul.f32 %v628_v31, %v1926_v20  ;;  %1116 = vmatpush.bf16.msrb.mxu2 %v1507_v43  ;;  %v1489_v1 = vld [vmem:[#allocation14 + $0x18] sm:$0xff] }
 0x1ea   :  { %1553 = vrcp.f32 %v2045_v58  ;;  %v2059_v9 = vadd.f32 %v469_v56, %v245_v45  ;;  %v2061_v36 = vadd.f32 1.1283791, %v578_v49  ;;  %v657_v13 = vadd.f32 0.18741608, %v656_v52  ;;  %v1498_v45 = vld [vmem:[#allocation14 + $0x60] sm:$0xff] }
 0x1eb   :  { %v694_v17 = vmul.f32 %v693_v54, %v1977_v30  ;;  %v705_v19 = vmul.f32 %v704_v61, %v1977_v30  ;;  %vm557_vm12 = vweird.f32 %v1989_v42  ;;  %v2066_v23 = vadd.f32 0.18741608, %v616_v57  ;;  %1103 = vmatpush.bf16.msrb.mxu1 %v1498_v45  ;;  %v1486_v57 = vld [vmem:[#allocation14] sm:$0xff] }
 0x1ec   :  { %v732_v24 = vmul.f32 %v731_v32, %v2021_v16  ;;  %v742_v25 = vadd.f32 0.001143296, %v741_v63  ;;  %v2070_v26 = vmul.f32 %v524_v5, %v2010_v10  ;;  %v2073_v27 = vadd.f32 %v1989_v42, %v554_v2  ;;  %v1515_v10 = vld [vmem:[#allocation14 + $0xe8] sm:$0xff]  ;;  %1089 = vmatpush.bf16.msrb.mxu0 %v1490_v18  ;;  %vm2098_vm13 = vmor %vm556_vm11, %vm557_vm12  ;;  %v1497_v2 = vld [vmem:[#allocation14 + $0x58] sm:$0xff] }
 0x1ed   :  { %v592_v28 = vmul.f32 %v2051_v4, %v2006_v60  ;;  %v706_v38 = vadd.f32 0.112945676, %v705_v19  ;;  %v2077_v31 = vor.u32 1.1754944e-38, %v562_v53  ;;  %v2079_v41 = vadd.f32 1.0, %v629_v7  ;;  %1130 = vmatpush.bf16.msrb.mxu3 %v1515_v10  ;;  %1117 = vmatpush.bf16.msrb.mxu2 %v1506_v11 }
 0x1ee   :  { %v743_v40 = vmul.f32 %v742_v25, %v2021_v16  ;;  %v2083_v29 = vmul.f32 0.70710677, %v2059_v9  ;;  %v600_v46 = vand.u32 2147483647, %v2006_v60  ;;  %v658_v47 = vmul.f32 %v657_v13, %v1943_v48 }
 0x1ef   :  { %v695_v49 = vadd.f32 0.05243302, %v694_v17  ;;  %v707_v52 = vmul.f32 %v706_v38, %v1977_v30  ;;  %v2092_v56 = vmul.f32 %v1994_v51, %v1878_v37  ;;  %v733_v61 = vadd.f32 0.0036580483, %v732_v24  ;;  %v1514_v24 = vld [vmem:[#allocation14 + $0xe0] sm:$0xff]  ;;  %1104 = vmatpush.bf16.msrb.mxu1 %v1497_v2  ;;  %v1513_v2 = vld [vmem:[#allocation14 + $0xd8] sm:$0xff] }
 0x1f0   :  { %v2088_v54 = vpop.eup %1553  ;;  %v744_v48 = vadd.f32 0.014752088, %v743_v40  ;;  %v768_v63 = vmul.f32 %v2083_v29, %v2083_v29  ;;  %v1317_v37 = vclamps-f32 %v2070_v26, 1.0  ;;  %v559_v62 = vsel %vm2098_vm13, %v1989_v42, %v2073_v27  ;;  %1090 = vmatpush.bf16.msrb.mxu0 %v1489_v1  ;;  %v1488_v26 = vld [vmem:[#allocation14 + $0x10] sm:$0xff] }
 0x1f1   :  { %v593_v51 = vsub.f32 1.0, %v592_v28  ;;  %v672_v53 = vmul.f32 %v2088_v54, %v2045_v58  ;;  %vm2111_vm14 = vcmp.eq.f32.partialorder %v560_v59, 8.507059e+37  ;;  %1555 = vrcp.f32 %v2079_v41  ;;  %v1496_v28 = vld [vmem:[#allocation14 + $0x50] sm:$0xff]  ;;  %1131 = vmatpush.bf16.msrb.mxu3 %v1514_v24 }
 0x1f2   :  { %v708_v15 = vadd.f32 0.4994258, %v707_v52  ;;  %v745_v5 = vmul.f32 %v744_v48, %v2021_v16  ;;  %v2117_v7 = vmin.f32 %v768_v63, 16.0  ;;  %v659_v12 = vadd.f32 1.1283791, %v658_v47 }
 0x1f3   :  { %v673_v13 = vsub.f32 1.0, %v672_v53  ;;  %v682_v17 = vand.u32 2147483648, %v2045_v58  ;;  %v696_v19 = vmul.f32 %v695_v49, %v1977_v30  ;;  %v734_v25 = vmul.f32 %v733_v61, %v2021_v16  ;;  %v1505_v61 = vld [vmem:[#allocation14 + $0x98] sm:$0xff]  ;;  %1105 = vmatpush.bf16.msrb.mxu1 %v1496_v28 }
 0x1f4   :  { %v709_v59 = vmul.f32 %v708_v15, %v1977_v30  ;;  %v746_v18 = vadd.f32 0.112945676, %v745_v5  ;;  %v770_v45 = vmul.f32 2.1237322e-06, %v2117_v7  ;;  %vm677_vm15 = vweird.f32 %v2088_v54  ;;  %1091 = vmatpush.bf16.msrb.mxu0 %v1488_v26  ;;  %1118 = vmatpush.bf16.msrb.mxu2 %v1505_v61  ;;  %v1503_v61 = vld [vmem:[#allocation14 + $0x88] sm:$0xff] }
 0x1f5   :  { %v674_v38 = vmul.f32 %v2088_v54, %v673_v13  ;;  %v680_v40 = vand.u32 2147483647, %v2045_v58  ;;  %v781_v43 = vmul.f32 3.8918573e-05, %v2117_v7  ;;  %v594_v10 = vmul.f32 %v2051_v4, %v593_v51  ;;  %v1495_v13 = vld [vmem:[#allocation14 + $0x48] sm:$0xff]  ;;  %1132 = vmatpush.bf16.msrb.mxu3 %v1513_v2 }
 0x1f6   :  { %v2129_v47 = vadd.f32 1.0, %v709_v59  ;;  %v747_v49 = vmul.f32 %v746_v18, %v2021_v16  ;;  %v771_v52 = vadd.f32 0.00028619796, %v770_v45  ;;  %vm676_vm0 = vweird.f32 %v2045_v58  ;;  %v1487_v58 = vld [vmem:[#allocation14 + $0x8] sm:$0xff]  ;;  %v1512_v18 = vld [vmem:[#allocation14 + $0xd0] sm:$0xff] }
 0x1f7   :  { %v675_v48 = vadd.f32 %v2088_v54, %v674_v38  ;;  %v683_v63 = vor.u32 1.1754944e-38, %v682_v17  ;;  %v782_v1 = vadd.f32 0.001143296, %v781_v43  ;;  %v2134_v53 = vpop.eup %1555  ;;  %v660_v15 = vmul.f32 %v659_v12, %v1929_v21  ;;  %vm2139_vm1 = vmor %vm676_vm0, %vm677_vm15  ;;  %1106 = vmatpush.bf16.msrb.mxu1 %v1495_v13 }
 0x1f8   :  { %v697_v5 = vadd.f32 0.18741608, %v696_v19  ;;  %1557 = vrcp.f32 %v2129_v47  ;;  %v735_v11 = vadd.f32 0.05243302, %v734_v25  ;;  %vm681_vm2 = vcmp.eq.f32.partialorder %v680_v40, 8.507059e+37  ;;  %v1504_v25 = vld [vmem:[#allocation14 + $0x90] sm:$0xff]  ;;  %1092 = vmatpush.bf16.msrb.mxu0 %v1487_v58 }
 0x1f9   :  { %v679_v17 = vsel %vm2139_vm1, %v2088_v54, %v675_v48  ;;  %v748_v21 = vadd.f32 0.4994258, %v747_v49  ;;  %v772_v12 = vmul.f32 %v771_v52, %v2117_v7  ;;  %vm597_vm3 = vweird.f32 %v2051_v4  ;;  %1119 = vmatpush.bf16.msrb.mxu2 %v1504_v25  ;;  %v1494_v49 = vld [vmem:[#allocation14 + $0x40] sm:$0xff]  ;;  %1133 = vmatpush.bf16.msrb.mxu3 %v1512_v18  ;;  %v1511_v48 = vld [vmem:[#allocation14 + $0xc8] sm:$0xff] }
 0x1fa   :  { %v602_v19 = vand.u32 2147483648, %v2006_v60  ;;  %v684_v24 = vsel %vm681_vm2, %v683_v63, %v679_v17  ;;  %v783_v59 = vmul.f32 %v782_v1, %v2117_v7  ;;  %v808_v45 = vadd.f32 1.0, %v1317_v37 }
 0x1fb   :  { %v564_v54 = vsel %vm2111_vm14, %v2077_v31, %v559_v62  ;;  %v685_v26 = vmul.f32 %v684_v24, %v660_v15  ;;  %v749_v28 = vmul.f32 %v748_v21, %v2021_v16  ;;  %v595_v38 = vadd.f32 %v2051_v4, %v594_v10  ;;  %1107 = vmatpush.bf16.msrb.mxu1 %v1494_v49 }
 0x1fc   :  { %v698_v40 = vmul.f32 %v697_v5, %v1977_v30  ;;  %v736_v43 = vmul.f32 %v735_v11, %v2021_v16  ;;  %v784_v37 = vadd.f32 0.014752088, %v783_v59  ;;  %vm596_vm4 = vweird.f32 %v2006_v60  ;;  %1093 = vmatpush.bf16.msrb.mxu0 %v1486_v57 }
 0x1fd   :  { %v1321_v42 = vclamps-f32 %v685_v26, 1.0  ;;  %v2164_v27 = vadd.f32 1.0, %v749_v28  ;;  %v773_v31 = vadd.f32 0.0036580483, %v772_v12  ;;  %vm2168_vm5 = vcmp.eq.f32.partialorder %v600_v46, 8.507059e+37  ;;  %vm2178_vm6 = vmor %vm596_vm4, %vm597_vm3  ;;  %1120 = vmatpush.bf16.msrb.mxu2 %v1503_v61  ;;  %1134 = vmatpush.bf16.msrb.mxu3 %v1511_v48  ;;  %v1502_v12 = vld [vmem:[#allocation14 + $0x80] sm:$0xff] }
 0x1fe   :  { %v1558_v62 = vpop.eup %1557  ;;  %v603_v30 = vor.u32 1.1754944e-38, %v602_v19  ;;  %v632_v10 = vmul.f32 %v2134_v53, %v2079_v41  ;;  %v785_v52 = vmul.f32 %v784_v37, %v2117_v7  ;;  %v565_v63 = vmul.f32 %v564_v54, %v2092_v56  ;;  %v1510_v19 = vld [vmem:[#allocation14 + $0xc0] sm:$0xff] }
 0x1ff   :  { %v812_v60 = vadd.f32 1.0, %v1321_v42  ;;  %v712_v46 = vmul.f32 %v1558_v62, %v2129_v47  ;;  %1559 = vrcp.f32 %v2164_v27  ;;  %v816_v2 = vmul.f32 %v808_v45, %v1983_v33 }
 0x200   :  { %v599_v15 = vsel %vm2178_vm6, %v2051_v4, %v595_v38  ;;  %v699_v51 = vadd.f32 1.1283791, %v698_v40  ;;  %v737_v56 = vadd.f32 0.18741608, %v736_v43  ;;  %v774_v58 = vmul.f32 %v773_v31, %v2117_v7 }
 0x201   :  { %v820_v5 = vmul.f32 %v812_v60, %v1997_v34  ;;  %v713_v11 = vsub.f32 1.0, %v712_v46  ;;  %v786_v13 = vadd.f32 0.112945676, %v785_v52  ;;  %v633_v17 = vsub.f32 1.0, %v632_v10  ;;  %1121 = vmatpush.bf16.msrb.mxu2 %v1502_v12  ;;  %1135 = vmatpush.bf16.msrb.mxu3 %v1510_v19 }
 0x202   :  { %v720_v21 = vand.u32 2147483647, %v2129_v47  ;;  %v722_v33 = vand.u32 2147483648, %v2129_v47  ;;  %vm717_vm7 = vweird.f32 %v1558_v62  ;;  %v1318_v25 = vclamps-f32 %v565_v63, 1.0 }
 0x203   :  { %v714_v24 = vmul.f32 %v1558_v62, %v713_v11  ;;  %v787_v4 = vmul.f32 %v786_v13, %v2117_v7  ;;  %v826_v59 = vpack.c.bf16 %v820_v5, %v816_v2  ;;  %v580_v34 = vmul.f32 %v2061_v36, %v1898_v50 }
 0x204   :  { %v604_v18 = vsel %vm2168_vm5, %v603_v30, %v599_v15  ;;  %v618_v45 = vmul.f32 %v2066_v23, %v1926_v20  ;;  %vm636_vm8 = vweird.f32 %v2079_v41  ;;  %vm716_vm9 = vweird.f32 %v2129_v47 }
 0x205   :  { %v1560_v54 = vpop.eup %1559  ;;  %v715_v26 = vadd.f32 %v1558_v62, %v714_v24  ;;  %v775_v28 = vadd.f32 0.05243302, %v774_v58  ;;  %v788_v38 = vadd.f32 0.4994258, %v787_v4  ;;  %1094 = vmatmul.bf16.vlgmr.msrb.gmra.mxu0 %v826_v59  ;;  %v634_v40 = vmul.f32 %v2134_v53, %v633_v17  ;;  %vm718_vm10 = vmor %vm716_vm9, %vm717_vm7 }
 0x206   :  { %v723_v50 = vor.u32 1.1754944e-38, %v722_v33  ;;  %v738_v36 = vmul.f32 %v737_v56, %v2021_v16  ;;  %v752_v20 = vmul.f32 %v1560_v54, %v2164_v27  ;;  %v700_v23 = vmul.f32 %v699_v51, %v1959_v3 }
 0x207   :  { %v719_v43 = vsel %vm718_vm10, %v1558_v62, %v715_v26  ;;  %vm721_vm11 = vcmp.eq.f32.partialorder %v720_v21, 8.507059e+37  ;;  %v789_v37 = vmul.f32 %v788_v38, %v2117_v7  ;;  %v809_v47 = vadd.f32 1.0, %v1318_v25 }
 0x208   :  { %v605_v57 = vmul.f32 %v604_v18, %v580_v34  ;;  %v724_v49 = vsel %vm721_vm11, %v723_v50, %v719_v43  ;;  %v753_v42 = vsub.f32 1.0, %v752_v20  ;;  %v762_v32 = vand.u32 2147483648, %v2164_v27 }
 0x209   :  { %v725_v31 = vmul.f32 %v724_v49, %v700_v23  ;;  %v776_v30 = vmul.f32 %v775_v28, %v2117_v7  ;;  %v790_v10 = vadd.f32 1.0, %v789_v37  ;;  %v739_v52 = vadd.f32 1.1283791, %v738_v36 }
 0x20a   :  { %v754_v16 = vmul.f32 %v1560_v54, %v753_v42  ;;  %vm757_vm12 = vweird.f32 %v1560_v54  ;;  %v760_v61 = vand.u32 2147483647, %v2164_v27  ;;  %v635_v3 = vadd.f32 %v2134_v53, %v634_v40 }
 0x20b   :  { %vm637_vm13 = vweird.f32 %v2134_v53  ;;  %v1322_v62 = vclamps-f32 %v725_v31, 1.0  ;;  %1561 = vrcp.f32 %v790_v10  ;;  %v640_v48 = vand.u32 2147483647, %v2079_v41 }
 0x20c   :  { %v642_v63 = vand.u32 2147483648, %v2079_v41  ;;  %v755_v1 = vadd.f32 %v1560_v54, %v754_v16  ;;  %vm756_vm14 = vweird.f32 %v2164_v27  ;;  %v1319_v60 = vclamps-f32 %v605_v57, 1.0  ;;  %vm2217_vm0 = vmor %vm636_vm8, %vm637_vm13 }
 0x20d   :  { %v813_v46 = vadd.f32 1.0, %v1322_v62  ;;  %vm758_vm15 = vmor %vm756_vm14, %vm757_vm12  ;;  %v763_v2 = vor.u32 1.1754944e-38, %v762_v32  ;;  %v777_v15 = vadd.f32 0.18741608, %v776_v30  ;;  %v619_v51 = vadd.f32 1.1283791, %v618_v45 }
 0x20e   :  { %v740_v5 = vmul.f32 %v739_v52, %v1980_v22  ;;  %v759_v11 = vsel %vm758_vm15, %v1560_v54, %v755_v1  ;;  %vm761_vm1 = vcmp.eq.f32.partialorder %v760_v61, 8.507059e+37  ;;  %v817_v58 = vmul.f32 %v809_v47, %v1986_v39 }
 0x20f   :  { %v639_v27 = vsel %vm2217_vm0, %v2134_v53, %v635_v3  ;;  %v821_v13 = vmul.f32 %v813_v46, %v1999_v35  ;;  %v764_v17 = vsel %vm761_vm1, %v763_v2, %v759_v11  ;;  %v643_v21 = vor.u32 1.1754944e-38, %v642_v63  ;;  %v1540_v3 = vld [vmem:[%s2253_s8] ss:$0 sm:$0xff] }
 0x210   :  { %v765_v33 = vmul.f32 %v764_v17, %v740_v5  ;;  %v810_v12 = vadd.f32 1.0, %v1319_v60  ;;  %vm641_vm2 = vcmp.eq.f32.partialorder %v640_v48, 8.507059e+37  ;;  %v778_v19 = vmul.f32 %v777_v15, %v2117_v7 }
 0x211   :  { %v1562_v41 = vpop.eup %1561  ;;  %v827_v24 = vpack.c.bf16 %v821_v13, %v817_v58  ;;  %v644_v22 = vsel %vm641_vm2, %v643_v21, %v639_v27  ;;  %v474_v39 = vmul.f32 0.5, %v1891_v44  ;;  %v620_v25 = vmul.f32 %v619_v51, %v1913_v0 }
 0x212   :  { %v1323_v4 = vclamps-f32 %v765_v33, 1.0  ;;  %v792_v59 = vmul.f32 %v1562_v41, %v790_v10  ;;  %v478_v53 = vmul.f32 0.5, %v1968_v14  ;;  %v779_v54 = vadd.f32 1.1283791, %v778_v19 }
 0x213   :  { %1108 = vmatmul.bf16.vlgmr.msrb.gmra.mxu1 %v827_v24  ;;  %v818_v18 = vmul.f32 %v810_v12, %v474_v39  ;;  %v645_v45 = vmul.f32 %v644_v22, %v620_v25  ;;  %v802_v26 = vand.u32 2147483648, %v790_v10  ;;  %vm797_vm3 = vweird.f32 %v1562_v41 }
 0x214   :  { %v814_v35 = vadd.f32 1.0, %v1323_v4  ;;  %v793_v34 = vsub.f32 1.0, %v792_v59  ;;  %v800_v7 = vand.u32 2147483647, %v790_v10  ;;  %vm796_vm4 = vweird.f32 %v790_v10 }
 0x215   :  { %vm798_vm5 = vmor %vm796_vm4, %vm797_vm3  ;;  %v803_v44 = vor.u32 1.1754944e-38, %v802_v26  ;;  %v1320_v36 = vclamps-f32 %v645_v45, 1.0  ;;  %v780_v0 = vmul.f32 %v779_v54, %v2083_v29  ;;  %v475_v47 = vmul.f32 0.5, %v1905_v55 }
 0x216   :  { %v822_v28 = vmul.f32 %v814_v35, %v478_v53  ;;  %v794_v38 = vmul.f32 %v1562_v41, %v793_v34  ;;  %vm801_vm6 = vcmp.eq.f32.partialorder %v800_v7, 8.507059e+37  ;;  %v479_v57 = vmul.f32 0.5, %v2059_v9 }
 0x217   :  { %v811_v43 = vadd.f32 1.0, %v1320_v36 }
 0x218   :  { %v795_v40 = vadd.f32 %v1562_v41, %v794_v38  ;;  %v828_v50 = vpack.c.bf16 %v822_v28, %v818_v18 }
 0x219   :  { %v819_v42 = vmul.f32 %v811_v43, %v475_v47 }
 0x21a   :  { %v799_v20 = vsel %vm798_vm5, %v1562_v41, %v795_v40  ;;  %1122 = vmatmul.bf16.vlgmr.msrb.gmra.mxu2 %v828_v50 }
 0x21b   :  { %v804_v14 = vsel %vm801_vm6, %v803_v44, %v799_v20 }
 0x21c   :  { %v805_v23 = vmul.f32 %v804_v14, %v780_v0 }
 0x21e   :  { %v1324_v37 = vclamps-f32 %v805_v23, 1.0 }
 0x220   :  { %v815_v49 = vadd.f32 1.0, %v1324_v37 }
 0x222   :  { %v823_v31 = vmul.f32 %v815_v49, %v479_v57 }
 0x224   :  { %v829_v32 = vpack.c.bf16 %v823_v31, %v819_v42 }
 0x226   :  { %1136 = vmatmul.bf16.vlgmr.msrb.gmra.mxu3 %v829_v32 }
 0x282   :  { %v1095_v30 = vpop.f32.mrf.mxu0 }
 0x28a   :  { %v1097_v61 = vpop.f32.mrf.mxu0 }
 0x290   :  { %v1109_v10 = vpop.f32.mrf.mxu1 }
 0x291   :  { %v1110_v29 = vadd.f32 %v1109_v10, %v1095_v30 }
 0x298   :  { %v1111_v62 = vpop.f32.mrf.mxu1 }
 0x299   :  { %v1112_v9 = vadd.f32 %v1111_v62, %v1097_v61 }
 0x29d   :  { %v1123_v52 = vpop.f32.mrf.mxu2 }
 0x29e   :  { %v1124_v16 = vadd.f32 %v1123_v52, %v1110_v29 }
 0x2a5   :  { %v1125_v63 = vpop.f32.mrf.mxu2 }
 0x2a6   :  { %v1126_v46 = vadd.f32 %v1125_v63, %v1112_v9 }
 0x2a9   :  { %v1137_v48 = vpop.f32.mrf.mxu3 }
 0x2aa   :  { %v1138_v55 = vadd.f32 %v1137_v48, %v1124_v16 }
 0x2ac   :  { %v1155_v1 = vadd.f32 %v1540_v3, %v1138_v55 }
 0x2ae   :  { %v1159_v60 = vadd.f32 %v1155_v1, %v1832_v6 }
 0x2b0   :  { %1161 = vst [vmem:[#allocation16] sm:$0xff] %v1159_v60 }
 0x2b1   :  { %v1139_v2 = vpop.f32.mrf.mxu3 }
 0x2b2   :  { %v1140_v15 = vadd.f32 %v1139_v2, %v1126_v46 }
 0x2b4   :  { %v1156_v51 = vadd.f32 %v1540_v3, %v1140_v15 }
 0x2b6   :  { %v1160_v56 = vadd.f32 %v1156_v51, %v1835_v8 }
 0x2b8   :  { %1162 = vst [vmem:[#allocation16 + $0x8] sm:$0xff] %v1160_v56 }
 0x2b9   :  { %1175 = dma.vmem_to_hbm [thread:$0]  %s1168_s24, 256, %s1170_s26, [#allocation7], %s1742_s17, %s1742_s17, %s1743_s18  }
 0x2ba   :  { %1739 = dma.done.wait [#allocation7], 256  }
 0x2bb   :  { %1740 = vsyncadd [#allocation7], 4294967040 }
 0x2bc   :  { %1180 = vsyncpa [#allocation6], 1 }
 0x2bd   :  { %1181 = vsyncpa [#allocation9], 1 }
 0x2be   :  { %1182 = vsyncpa [#allocation12], 1 }
 0x2bf   :  { %1183 = vsyncpa [#allocation15], 1 }
 0x2c0   :  { %1184 = vsyncpa [#allocation7], 1 }

</bundles_post_ra>
